<compile_context>
chip_gen: v7x
topology: tpu7x:2x2x1
jax: 0.10.0
libtpu: 0.0.40
codegen_flags: <defaults>
</compile_context>

<pallas_src>
import functools
import math

import jax
import jax.numpy as jnp
from jax.experimental import pallas as pl
from jax.experimental.pallas import tpu as pltpu

_LANES = 128
_MiB = 1024 * 1024


def _gelu_exact(x):
    # nn.GELU() default in PyTorch is the exact (erf-based) GELU.
    return 0.5 * x * (1.0 + jax.lax.erf(x * (1.0 / math.sqrt(2.0))))


def _gelu_tanh(x):
    # EUP-friendly approximation (changes numerics vs the PyTorch default).
    return jax.nn.gelu(x, approximate=True)


def _round_up(v, m):
    return ((v + m - 1) // m) * m


def _cdiv(a, b):
    return -(-a // b)


def _sublane(dtype):
    # f32 -> 8, bf16 -> 16, int8/fp8 -> 32 sublanes per packed vreg row.
    return max(8, 32 // jnp.dtype(dtype).itemsize)


def _vmem_config():
    """Generation-aware (vmem_limit_bytes, vmem_budget_bytes, dual_tc)."""
    phys = None
    try:
        phys = int(pltpu.get_tpu_info().vmem_capacity_bytes)
    except Exception:
        phys = None
    if phys is not None and phys >= 100 * _MiB:
        # v5e / v6e: 128 MiB physical VMEM, single TensorCore per chip.
        return 64 * _MiB, 48 * _MiB, False
    if phys is not None:
        # v7x: 64 MiB physical VMEM per TC, two TensorCores per chip.
        return 48 * _MiB, 32 * _MiB, True
    # Unknown generation: conservative limits, safe everywhere.
    return 48 * _MiB, 32 * _MiB, False


def _pick_tile_m(Mf, Df, Hf, x_dtype, w_dtype, out_dtype, vmem_budget, dual_tc):
    """VMEM-derived rows-per-tile; sublane aligned; even split on dual-TC."""
    sub = _sublane(x_dtype)
    if Mf <= sub:
        return Mf
    xb = jnp.dtype(x_dtype).itemsize
    ob = jnp.dtype(out_dtype).itemsize
    wb = jnp.dtype(w_dtype).itemsize
    # Resident weights/biases are still double-buffered by default BlockSpecs.
    resident = 2 * (2 * Df * Hf * wb + 4 * (Hf + Df))
    if resident >= vmem_budget:
        # TODO(synk): add a K/N-tiled weight-streaming fallback for adapters whose
        # resident weights do not fit VMEM (earliest on v7x's 64 MiB).
        raise ValueError("Adapter weights too large for the resident-weight kernel.")
    # Double-buffered x/out tiles plus f32 intermediates (h, y) per row.
    per_row = 2 * Df * xb + 2 * Df * ob + 4 * Hf + 4 * Df
    tile = int((vmem_budget - resident) // max(per_row, 1))
    tile = min(tile, 4096)                     # loose cap; budget is the real bound
    tile = min(tile, _round_up(Mf, sub))       # never bigger than the problem
    tile = max(sub, (tile // sub) * sub)
    if dual_tc:
        # Balanced sharding across v7x's two TensorCores: even step count.
        steps = _cdiv(Mf, tile)
        if steps == 1:
            tile = max(sub, _round_up(_cdiv(Mf, 2), sub))
        elif steps % 2 == 1:
            tile = max(sub, _round_up(_cdiv(Mf, steps + 1), sub))
    return tile


def _adapter_kernel(x_ref, w1_ref, b1_ref, w2_ref, b2_ref, o_ref, *,
                    approximate_gelu, skip_connect):
    x = x_ref[...]                                                    # (tm, Df) native dtype
    # MXU pass 1: native operands, f32 accumulation.
    h = jnp.dot(x, w1_ref[...], preferred_element_type=jnp.float32)  # (tm, Hf) f32
    h = h + b1_ref[...]                                               # f32 bias
    h = _gelu_tanh(h) if approximate_gelu else _gelu_exact(h)         # f32 activation
    h = h.astype(w2_ref.dtype)                                        # native for MXU pass 2
    y = jnp.dot(h, w2_ref[...], preferred_element_type=jnp.float32)  # (tm, Df) f32
    y = y + b2_ref[...]
    if skip_connect:
        y = y + x.astype(jnp.float32)                                 # f32 residual
    o_ref[...] = y.astype(o_ref.dtype)                                # downcast only at store


def adapter_forward(x, w1, b1, w2, b2, *, skip_connect=True,
                    approximate_gelu=False, tile_m=None):
    """x: (B, L, D).  w1: (D, H), b1: (H,), w2: (H, D), b2: (D,)."""
    B, L, D = x.shape
    H = w1.shape[1]
    M = B * L
    x2d = x.reshape(M, D)

    vmem_limit, vmem_budget, dual_tc = _vmem_config()

    # Lane-dense fold: with D < 128 only D/128 lanes would be used and stores
    # would be masked vst.msk. Fold `fold` consecutive rows into one 128-lane
    # row and use block-diagonal weights (mathematically identical). M is padded
    # up to a multiple of fold (<= fold-1 rows) so the fold is always taken.
    fold = 1
    if D < _LANES and _LANES % D == 0:
        fold = _LANES // D
    Mpad = _round_up(M, fold) if fold > 1 else M
    if Mpad != M:
        x2d = jnp.pad(x2d, ((0, Mpad - M), (0, 0)))     # tiny: at most fold-1 rows
    if fold > 1:
        w1 = jnp.kron(jnp.eye(fold, dtype=w1.dtype), w1)   # (fold*D, fold*H) block-diag
        w2 = jnp.kron(jnp.eye(fold, dtype=w2.dtype), w2)   # (fold*H, fold*D) block-diag
        b1 = jnp.tile(b1, fold)
        b2 = jnp.tile(b2, fold)
        x2d = x2d.reshape(Mpad // fold, fold * D)
    # TODO(synk): for D not dividing 128 (e.g. 96) a padded fold would be needed
    # for lane-dense stores; we fall back to the unfolded layout there.

    Mf, Df = x2d.shape
    Hf = fold * H

    # Biases cast to f32 once here (not per grid step inside the kernel).
    b1_2d = b1.reshape(1, Hf).astype(jnp.float32)
    b2_2d = b2.reshape(1, Df).astype(jnp.float32)

    if tile_m is None:
        tile_m = _pick_tile_m(Mf, Df, Hf, x.dtype, w1.dtype, x.dtype,
                              vmem_budget, dual_tc)
    tile_m = max(1, min(int(tile_m), Mf))

    # Ragged tail block: OOB reads are unused garbage, OOB stores are masked.
    grid = (_cdiv(Mf, tile_m),)

    xb = jnp.dtype(x.dtype).itemsize
    wb = jnp.dtype(w1.dtype).itemsize
    cost = pl.CostEstimate(
        flops=4 * Mf * Df * Hf,
        transcendentals=Mf * Hf,
        bytes_accessed=2 * Mf * Df * xb + 2 * Df * Hf * wb + 4 * (Hf + Df),
    )

    kernel = functools.partial(_adapter_kernel,
                               approximate_gelu=approximate_gelu,
                               skip_connect=skip_connect)

    out2d = pl.pallas_call(
        kernel,
        out_shape=jax.ShapeDtypeStruct((Mf, Df), x.dtype),
        grid_spec=pltpu.PrefetchScalarGridSpec(
            num_scalar_prefetch=0,
            grid=grid,
            in_specs=[
                pl.BlockSpec((tile_m, Df), lambda i: (i, 0)),   # x tile (streamed)
                pl.BlockSpec((Df, Hf), lambda i: (0, 0)),       # W1 (resident)
                pl.BlockSpec((1, Hf), lambda i: (0, 0)),        # b1 (resident, f32)
                pl.BlockSpec((Hf, Df), lambda i: (0, 0)),       # W2 (resident)
                pl.BlockSpec((1, Df), lambda i: (0, 0)),        # b2 (resident, f32)
            ],
            out_specs=pl.BlockSpec((tile_m, Df), lambda i: (i, 0)),
        ),
        compiler_params=pltpu.CompilerParams(
            dimension_semantics=("parallel",),
            vmem_limit_bytes=vmem_limit,
        ),
        cost_estimate=cost,
    )(x2d, w1, b1_2d, w2, b2_2d)

    out2d = out2d.reshape(Mpad, D)
    if Mpad != M:
        out2d = out2d[:M]
    return out2d.reshape(B, L, D)


def _reference(x, w1, b1, w2, b2, skip_connect=True):
    h = jnp.einsum("bld,dh->blh", x, w1) + b1
    h = _gelu_exact(h)
    y = jnp.einsum("blh,hd->bld", h, w2) + b2
    return x + y if skip_connect else y


if __name__ == "__main__":
    # Adapter(D_features=32, mlp_ratio=0.25) -> D_hidden = 8
    D_features = 32
    D_hidden = int(D_features * 0.25)

    key = jax.random.PRNGKey(0)
    kx, k1, k2, k3, k4, kx2, kx3 = jax.random.split(key, 7)

    # Deterministic synthetic params (shapes match nn.Linear weight.T / bias).
    w1 = jax.random.normal(k1, (D_features, D_hidden), dtype=jnp.float32) * 0.1
    b1 = jax.random.normal(k2, (D_hidden,), dtype=jnp.float32) * 0.1
    w2 = jax.random.normal(k3, (D_hidden, D_features), dtype=jnp.float32) * 0.1
    b2 = jax.random.normal(k4, (D_features,), dtype=jnp.float32) * 0.1

    def check(out, x, name):
        ref = _reference(x, w1, b1, w2, b2)
        assert out.shape == x.shape, f"shape mismatch ({name})"
        assert jnp.allclose(out, ref, atol=1e-5, rtol=1e-5), f"mismatch vs reference ({name})"

    # jit so the kron/bias folding is traced once per shape (hoisted out of eager calls).
    fwd = jax.jit(adapter_forward)

    # (1) Tiny single-tile case.
    x_a = jax.random.normal(kx, (2, 8, D_features), dtype=jnp.float32)
    check(jax.block_until_ready(fwd(x_a, w1, b1, w2, b2)), x_a, "small")

    # (2) Larger case exercising the auto-derived tile / even dual-TC split.
    x_b = jax.random.normal(kx2, (2, 64, D_features), dtype=jnp.float32)
    check(jax.block_until_ready(fwd(x_b, w1, b1, w2, b2)), x_b, "auto-tiled")

    # (3) Multi-step pipelined grid with a ragged tail block (M=140 -> Mf=35, tile_m=8).
    fwd_t8 = jax.jit(functools.partial(adapter_forward, tile_m=8))
    x_c = jax.random.normal(kx3, (2, 70, D_features), dtype=jnp.float32)
    check(jax.block_until_ready(fwd_t8(x_c, w1, b1, w2, b2)), x_c, "ragged-tail")

    # (4) M not divisible by the lane fold (pads 3 rows, slices them back off).
    x_d = jax.random.normal(kx, (1, 13, D_features), dtype=jnp.float32)
    check(jax.block_until_ready(fwd(x_d, w1, b1, w2, b2)), x_d, "fold-pad")

    print("KERNEL_OK")
</pallas_src>

<mosaic_0001>
module attributes {stable_mosaic.version = 11 : i64} {
  func.func @_adapter_kernel(%arg0: i32, %arg1: memref<4x128xf32, #tpu.memory_space<vmem>>, %arg2: memref<128x32xf32, #tpu.memory_space<vmem>>, %arg3: memref<1x32xf32, #tpu.memory_space<vmem>>, %arg4: memref<32x128xf32, #tpu.memory_space<vmem>>, %arg5: memref<1x128xf32, #tpu.memory_space<vmem>>, %arg6: memref<4x128xf32, #tpu.memory_space<vmem>>) attributes {dimension_semantics = [#tpu.dimension_semantics<parallel>], iteration_bounds = array<i64: 1>, scalar_prefetch = 0 : i64, scratch_operands = 0 : i64, tpu.core_type = #tpu.core_type<tc>, window_params = [{transform_indices = @transform_0, window_bounds = array<i64: 4, 128>}, {pipeline_mode = #tpu.pipeline_mode<synchronous>, transform_indices = @transform_1, window_bounds = array<i64: 128, 32>}, {pipeline_mode = #tpu.pipeline_mode<synchronous>, transform_indices = @transform_2, window_bounds = array<i64: 1, 32>}, {pipeline_mode = #tpu.pipeline_mode<synchronous>, transform_indices = @transform_3, window_bounds = array<i64: 32, 128>}, {pipeline_mode = #tpu.pipeline_mode<synchronous>, transform_indices = @transform_4, window_bounds = array<i64: 1, 128>}, {transform_indices = @transform_5, window_bounds = array<i64: 4, 128>}]} {
    %c0 = arith.constant 0 : index
    %c0_0 = arith.constant 0 : index
    %0 = vector.load %arg1[%c0, %c0_0] : memref<4x128xf32, #tpu.memory_space<vmem>>, vector<4x128xf32>
    %c0_1 = arith.constant 0 : index
    %c0_2 = arith.constant 0 : index
    %1 = vector.load %arg2[%c0_1, %c0_2] : memref<128x32xf32, #tpu.memory_space<vmem>>, vector<128x32xf32>
    %cst = arith.constant dense<0.000000e+00> : vector<4x32xf32>
    %2 = tpu.matmul %0, %1, %cst {dimension_numbers = #tpu.dot_dimension_numbers<[1], [0], [0], [1], [0, 0, 1, 1], [], []>} : vector<4x128xf32>, vector<128x32xf32>, vector<4x32xf32> -> vector<4x32xf32>
    %c0_3 = arith.constant 0 : index
    %c0_4 = arith.constant 0 : index
    %3 = vector.load %arg3[%c0_3, %c0_4] : memref<1x32xf32, #tpu.memory_space<vmem>>, vector<1x32xf32>
    %4 = vector.broadcast %3 : vector<1x32xf32> to vector<4x32xf32>
    %5 = arith.addf %2, %4 : vector<4x32xf32>
    %cst_5 = arith.constant 5.000000e-01 : f32
    %6 = vector.broadcast %cst_5 : f32 to vector<4x32xf32>
    %7 = arith.mulf %6, %5 : vector<4x32xf32>
    %cst_6 = arith.constant 0.707106769 : f32
    %8 = vector.broadcast %cst_6 : f32 to vector<4x32xf32>
    %9 = arith.mulf %5, %8 : vector<4x32xf32>
    %10 = math.erf %9 : vector<4x32xf32>
    %cst_7 = arith.constant 1.000000e+00 : f32
    %11 = vector.broadcast %cst_7 : f32 to vector<4x32xf32>
    %12 = arith.addf %11, %10 : vector<4x32xf32>
    %13 = arith.mulf %7, %12 : vector<4x32xf32>
    %c0_8 = arith.constant 0 : index
    %c0_9 = arith.constant 0 : index
    %14 = vector.load %arg4[%c0_8, %c0_9] : memref<32x128xf32, #tpu.memory_space<vmem>>, vector<32x128xf32>
    %cst_10 = arith.constant dense<0.000000e+00> : vector<4x128xf32>
    %15 = tpu.matmul %13, %14, %cst_10 {dimension_numbers = #tpu.dot_dimension_numbers<[1], [0], [0], [1], [0, 0, 1, 1], [], []>} : vector<4x32xf32>, vector<32x128xf32>, vector<4x128xf32> -> vector<4x128xf32>
    %c0_11 = arith.constant 0 : index
    %c0_12 = arith.constant 0 : index
    %16 = vector.load %arg5[%c0_11, %c0_12] : memref<1x128xf32, #tpu.memory_space<vmem>>, vector<1x128xf32>
    %17 = vector.broadcast %16 : vector<1x128xf32> to vector<4x128xf32>
    %18 = arith.addf %15, %17 : vector<4x128xf32>
    %19 = arith.addf %18, %0 : vector<4x128xf32>
    %c0_13 = arith.constant 0 : index
    %c0_14 = arith.constant 0 : index
    %20 = vector.load %arg6[%c0_13, %c0_14] : memref<4x128xf32, #tpu.memory_space<vmem>>, vector<4x128xf32>
    tpu.vector_store %arg6[%c0_13, %c0_14], %19 {strides = array<i32>} : memref<4x128xf32, #tpu.memory_space<vmem>>, vector<4x128xf32>,
    return
  }
  func.func @transform_0(%arg0: i32) -> (i32, i32) {
    %c0_i32 = arith.constant 0 : i32
    %c0_i32_0 = arith.constant 0 : i32
    return %arg0, %c0_i32 : i32, i32
  }
  func.func @transform_1(%arg0: i32) -> (i32, i32) {
    %c0_i32 = arith.constant 0 : i32
    %c0_i32_0 = arith.constant 0 : i32
    %c0_i32_1 = arith.constant 0 : i32
    return %c0_i32, %c0_i32_0 : i32, i32
  }
  func.func @transform_2(%arg0: i32) -> (i32, i32) {
    %c0_i32 = arith.constant 0 : i32
    %c0_i32_0 = arith.constant 0 : i32
    %c0_i32_1 = arith.constant 0 : i32
    return %c0_i32, %c0_i32_0 : i32, i32
  }
  func.func @transform_3(%arg0: i32) -> (i32, i32) {
    %c0_i32 = arith.constant 0 : i32
    %c0_i32_0 = arith.constant 0 : i32
    %c0_i32_1 = arith.constant 0 : i32
    return %c0_i32, %c0_i32_0 : i32, i32
  }
  func.func @transform_4(%arg0: i32) -> (i32, i32) {
    %c0_i32 = arith.constant 0 : i32
    %c0_i32_0 = arith.constant 0 : i32
    %c0_i32_1 = arith.constant 0 : i32
    return %c0_i32, %c0_i32_0 : i32, i32
  }
  func.func @transform_5(%arg0: i32) -> (i32, i32) {
    %c0_i32 = arith.constant 0 : i32
    %c0_i32_0 = arith.constant 0 : i32
    return %arg0, %c0_i32 : i32, i32
  }
}

</mosaic_0001>

<bundles_post_ra>
// kernel: tile.13
= control target key start
LH: loop header
LB: loop body
LE: loop exit
PB: predicated region body
PF: predicated region fallthrough
CT: control target
= control target key end

     0   :  { %s22_s0 = inlined_call_operand.vmem [shape: f32[8], index: 0, kind: input, shape index: {}]   ;;  %s23_s1 = inlined_call_operand.vmem [shape: f32[4,8], index: 1, kind: output, shape index: {}]  }
   0x1   :  { %v4_v0 = vld [vmem:[%s22_s0] ss:$0 sm:$0xff] }
   0x2   :  { %5 = vst [vmem:[%s23_s1] sm:$0xf] %v4_v0 }

// kernel: tile.18
= control target key start
LH: loop header
LB: loop body
LE: loop exit
PB: predicated region body
PF: predicated region fallthrough
CT: control target
= control target key end

     0   :  { %vm7_vm0 = vcmask 64512   ;;  %s37_s8 = smov 8   ;;  %s38_s9 = smov 16   ;;  %vm13_vm1 = vcmask 261312   ;;  %vm19_vm2 = vcmask 195712   ;;  %vm25_vm3 = vcmask 130112   ;;  %s55_s0 = inlined_call_operand.vmem [shape: f32[4,8], index: 0, kind: input, shape index: {}]   ;;  %s56_s1 = inlined_call_operand.vmem [shape: f32[1,32], index: 1, kind: output, shape index: {}]  }
   0x1   :  { %v4_v0 = vld [vmem:[%s55_s0] sm:$0xf]  ;;  %s36_s0 = smov 24  }
   0x2   :  { %5 = vst [vmem:[#allocation1] sm:$0xf] %v4_v0 }
   0x9   :  { %v10_v1 = vld [vmem:[#allocation1 + $0x3] sm:$0x1]   ;;  %v22_v2 = vld [vmem:[#allocation1 + $0x1] sm:$0x1]   ;;  %v6_v3 = vld [vmem:[#allocation1] sm:$0x1]  }
   0xa   :  { %11 = vrot.lane.b32.xlu0 %v10_v1, %s36_s0  ;;  %23 = vrot.lane.b32.xlu1 %v22_v2, %s37_s8  ;;  %v16_v4 = vld [vmem:[#allocation1 + $0x2] sm:$0x1]   ;;  %8 = vst.msk [vmem:[#allocation0] sm:$0x1] %vm7_vm0, %v6_v3  }
   0xe   :  { %17 = vrot.lane.b32.xlu0 %v16_v4, %s38_s9 }
  0x7c   :  { %v12_v5 = vpop.permute.xlu0 %11   ;;  %v24_v6 = vpop.permute.xlu1 %23  }
  0x7d   :  { %14 = vst.msk [vmem:[#allocation0] sm:$0x1] %vm13_vm1, %v12_v5  }
  0x80   :  { %v18_v7 = vpop.permute.xlu0 %17  }
  0x81   :  { %20 = vst.msk [vmem:[#allocation0] sm:$0x1] %vm19_vm2, %v18_v7  }
  0x82   :  { %26 = vst.msk [vmem:[#allocation0] sm:$0x1] %vm25_vm3, %v24_v6  }
  0x89   :  { %v30_v8 = vld [vmem:[#allocation0] sm:$0x1] }
  0x8a   :  { %32 = vst [vmem:[%s56_s1] sm:$0x1] %v30_v8 }

// kernel: tile.17
= control target key start
LH: loop header
LB: loop body
LE: loop exit
PB: predicated region body
PF: predicated region fallthrough
CT: control target
= control target key end

     0   :  { %s22_s0 = inlined_call_operand.vmem [shape: f32[32], index: 0, kind: input, shape index: {}]   ;;  %s23_s1 = inlined_call_operand.vmem [shape: f32[4,32], index: 1, kind: output, shape index: {}]  }
   0x1   :  { %v4_v0 = vld [vmem:[%s22_s0] ss:$0 sm:$0xff] }
   0x2   :  { %5 = vst [vmem:[%s23_s1] sm:$0xf] %v4_v0 }

// kernel: tile.19
= control target key start
LH: loop header
LB: loop body
LE: loop exit
PB: predicated region body
PF: predicated region fallthrough
CT: control target
= control target key end

     0   :  { %vm7_vm0 = vcmask 261120   ;;  %s37_s8 = smov 32   ;;  %s38_s9 = smov 64   ;;  %vm13_vm1 = vcmask 1048320   ;;  %vm19_vm2 = vcmask 785920   ;;  %vm25_vm3 = vcmask 523520   ;;  %s55_s0 = inlined_call_operand.vmem [shape: f32[4,32], index: 0, kind: input, shape index: {}]   ;;  %s56_s1 = inlined_call_operand.vmem [shape: f32[1,128], index: 1, kind: output, shape index: {}]  }
   0x1   :  { %v4_v0 = vld [vmem:[%s55_s0] sm:$0xf]  ;;  %s36_s0 = smov 96  }
   0x2   :  { %5 = vst [vmem:[#allocation1] sm:$0xf] %v4_v0 }
   0x9   :  { %v10_v1 = vld [vmem:[#allocation1 + $0x3] sm:$0x1]   ;;  %v22_v2 = vld [vmem:[#allocation1 + $0x1] sm:$0x1]   ;;  %v6_v3 = vld [vmem:[#allocation1] sm:$0x1]  }
   0xa   :  { %11 = vrot.lane.b32.xlu0 %v10_v1, %s36_s0  ;;  %23 = vrot.lane.b32.xlu1 %v22_v2, %s37_s8  ;;  %v16_v4 = vld [vmem:[#allocation1 + $0x2] sm:$0x1]   ;;  %8 = vst.msk [vmem:[#allocation0] sm:$0x1] %vm7_vm0, %v6_v3  }
   0xe   :  { %17 = vrot.lane.b32.xlu0 %v16_v4, %s38_s9 }
  0x7c   :  { %v12_v5 = vpop.permute.xlu0 %11   ;;  %v24_v6 = vpop.permute.xlu1 %23  }
  0x7d   :  { %14 = vst.msk [vmem:[#allocation0] sm:$0x1] %vm13_vm1, %v12_v5  }
  0x80   :  { %v18_v7 = vpop.permute.xlu0 %17  }
  0x81   :  { %20 = vst.msk [vmem:[#allocation0] sm:$0x1] %vm19_vm2, %v18_v7  }
  0x82   :  { %26 = vst.msk [vmem:[#allocation0] sm:$0x1] %vm25_vm3, %v24_v6  }
  0x89   :  { %v30_v8 = vld [vmem:[#allocation0] sm:$0x1] }
  0x8a   :  { %32 = vst [vmem:[%s56_s1] sm:$0x1] %v30_v8 }

// kernel: adapter_forward.1
= control target key start
LH: loop header
LB: loop body
LE: loop exit
PB: predicated region body
PF: predicated region fallthrough
CT: control target
= control target key end

     0   :  { %v316_v0 = vmov 0.0|0.0   ;;  %vm317_vm0 = vmmov 0   ;;  %v318_v4 = vmov 0.0   ;;  %vm130_vm1 = vcmask 261120   ;;  %s421_s1 = inlined_call_operand.vmem [shape: f32[128,32], index: 1, kind: input, shape index: {}]   ;;  %s422_s0 = inlined_call_operand.vmem [shape: f32[4,128], index: 0, kind: input, shape index: {}]   ;;  %s423_s3 = inlined_call_operand.vmem [shape: f32[32,128], index: 3, kind: input, shape index: {}]   ;;  %s424_s2 = inlined_call_operand.vmem [shape: f32[1,32], index: 2, kind: input, shape index: {}]   ;;  %s425_s4 = inlined_call_operand.vmem [shape: f32[1,128], index: 4, kind: input, shape index: {}]   ;;  %s426_s5 = inlined_call_operand.vmem [shape: f32[4,128], index: 5, kind: output, shape index: {}]  }
   0x1   :  { %281 = vmatprep.subr.bf16.mxu0 %v316_v0  ;;  %v21_v1 = vld [vmem:[%s421_s1] sm:$0xff]  ;;  %v22_v2 = vld [vmem:[%s421_s1 + $0x8] sm:$0xff]  ;;  %v23_v3 = vld [vmem:[%s421_s1 + $0x10] sm:$0xff]  ;;  %267 = vmatprep.mubr.msk.f32.mxu0 %vm317_vm0, %v318_v4 }
   0x2   :  { %v282_v5 = vpack.c.bf16 %v22_v2, %v21_v1  ;;  %v24_v6 = vld [vmem:[%s421_s1 + $0x18] sm:$0xff]  ;;  %305 = vmatprep.subr.bf16.mxu1 %v316_v0  ;;  %278 = vmatprep.mubr.msk.f32.mxu1 %vm317_vm0, %v318_v4  ;;  %v25_v8 = vld [vmem:[%s421_s1 + $0x20] sm:$0xff]  ;;  %v26_v9 = vld [vmem:[%s421_s1 + $0x28] sm:$0xff] }
   0x3   :  { %v285_v7 = vpack.c.bf16 %v24_v6, %v23_v3  ;;  %v288_v10 = vpack.c.bf16 %v26_v9, %v25_v8  ;;  %v27_v11 = vld [vmem:[%s421_s1 + $0x30] sm:$0xff]  ;;  %v28_v12 = vld [vmem:[%s421_s1 + $0x38] sm:$0xff]  ;;  %v29_v14 = vld [vmem:[%s421_s1 + $0x40] sm:$0xff] }
   0x4   :  { %283 = vmatpush3.bf16.msra.mxu0 %v282_v5  ;;  %v291_v13 = vpack.c.bf16 %v28_v12, %v27_v11  ;;  %v30_v15 = vld [vmem:[%s421_s1 + $0x48] sm:$0xff]  ;;  %v31_v17 = vld [vmem:[%s421_s1 + $0x50] sm:$0xff]  ;;  %v32_v18 = vld [vmem:[%s421_s1 + $0x58] sm:$0xff] }
   0x5   :  { %284 = vmatprep.subr.bf16.mxu0 %v316_v0  ;;  %v294_v16 = vpack.c.bf16 %v30_v15, %v29_v14  ;;  %v297_v19 = vpack.c.bf16 %v32_v18, %v31_v17  ;;  %v33_v20 = vld [vmem:[%s421_s1 + $0x60] sm:$0xff]  ;;  %v34_v21 = vld [vmem:[%s421_s1 + $0x68] sm:$0xff]  ;;  %v35_v23 = vld [vmem:[%s421_s1 + $0x70] sm:$0xff] }
   0x6   :  { %v300_v22 = vpack.c.bf16 %v34_v21, %v33_v20  ;;  %v36_v24 = vld [vmem:[%s421_s1 + $0x78] sm:$0xff]  ;;  %v20_v26 = vld [vmem:[%s422_s0] sm:$0xf]  ;;  %v120_v28 = vld [vmem:[%s423_s3 + $0x8] sm:$0xff] }
   0x7   :  { %v303_v25 = vpack.c.bf16 %v36_v24, %v35_v23  ;;  %v119_v27 = vld [vmem:[%s423_s3] sm:$0xff]  ;;  %v121_v30 = vld [vmem:[%s423_s3 + $0x10] sm:$0xff]  ;;  %v122_v31 = vld [vmem:[%s423_s3 + $0x18] sm:$0xff] }
   0x8   :  { %286 = vmatpush3.bf16.msra.mxu0 %v285_v7  ;;  %v306_v29 = vpack.c.bf16 %v120_v28, %v119_v27  ;;  %v309_v32 = vpack.c.bf16 %v122_v31, %v121_v30  ;;  %v210_v33 = vld [vmem:[%s424_s2] ss:$0 sm:$0xff] }
   0x9   :  { %287 = vmatprep.subr.bf16.mxu0 %v316_v0  ;;  %v211_v42 = vld [vmem:[%s425_s4] ss:$0 sm:$0xff] }
   0xa   :  { %307 = vmatpush3.bf16.msra.mxu1 %v306_v29 }
   0xb   :  { %308 = vmatprep.subr.bf16.mxu1 %v316_v0 }
   0xc   :  { %289 = vmatpush3.bf16.msra.mxu0 %v288_v10 }
   0xd   :  { %290 = vmatprep.subr.bf16.mxu0 %v316_v0 }
   0xe   :  { %310 = vmatpush3.bf16.msra.mxu1 %v309_v32 }
  0x10   :  { %292 = vmatpush3.bf16.msra.mxu0 %v291_v13 }
  0x11   :  { %293 = vmatprep.subr.bf16.mxu0 %v316_v0 }
  0x14   :  { %295 = vmatpush3.bf16.msra.mxu0 %v294_v16 }
  0x15   :  { %296 = vmatprep.subr.bf16.mxu0 %v316_v0 }
  0x18   :  { %298 = vmatpush3.bf16.msra.mxu0 %v297_v19 }
  0x19   :  { %299 = vmatprep.subr.bf16.mxu0 %v316_v0 }
  0x1c   :  { %301 = vmatpush3.bf16.msra.mxu0 %v300_v22 }
  0x1d   :  { %302 = vmatprep.subr.bf16.mxu0 %v316_v0 }
  0x20   :  { %304 = vmatpush3.bf16.msra.mxu0 %v303_v25 }
  0x23   :  { %268 = vmatmul.mubr.f32.vlgmr.msra.gmra.mrb[0].mxu0 %v20_v26 }
  0xf6   :  { %v110_v34 = vpop.f32.mrb[0].mxu0 }
  0xf7   :  { %v111_v35 = vadd.f32 %v210_v33, %v110_v34  ;;  %v269_v36 = vpop.f32.mrb[1].mxu0 }
  0xf9   :  { %v115_v37 = vmul.f32 0.70710677, %v111_v35  ;;  %v114_v39 = vmul.f32 0.5, %v111_v35 }
  0xfb   :  { %314 = verf.f32 %v115_v37 }
 0x105   :  { %v315_v38 = vpop.eup %314 }
 0x106   :  { %v117_v40 = vadd.f32 1.0, %v315_v38 }
 0x108   :  { %v118_v41 = vmul.f32 %v117_v40, %v114_v39 }
 0x10a   :  { %279 = vmatmul.mubr.msk.f32.vlgmr.msra.gmra.mrb[0].mxu1 %vm130_vm1, %v118_v41 }
 0x1dd   :  { %v200_v43 = vpop.f32.mrb[0].mxu1 }
 0x1de   :  { %v201_v44 = vadd.f32 %v211_v42, %v200_v43  ;;  %v280_v45 = vpop.f32.mrb[1].mxu1 }
 0x1e0   :  { %v204_v46 = vadd.f32 %v201_v44, %v20_v26 }
 0x1e2   :  { %205 = vst [vmem:[%s426_s5] sm:$0xf] %v204_v46 }

</bundles_post_ra>
